<compile_context>
chip_gen: v6e
topology: v6e:2x2x1
jax: 0.10.0
libtpu: 0.0.40
codegen_flags: <defaults>
</compile_context>

<pallas_src>
import functools

import numpy as np
import jax
import jax.numpy as jnp
from jax import lax
from jax.experimental import pallas as pl
from jax.experimental.pallas import tpu as pltpu

BN_EPS = 1e-5


def _round_up(x, m):
    return ((x + m - 1) // m) * m


def _inception_kernel(x_ref, w_ref, b_ref, o_ref, *, K, stride, dilation, TL):
    """One (batch sample, output-L tile) step.

    x_ref : (stride, Cin_pad, TL+HALO)  phase-split halo window, matmul dtype
    w_ref : (C3p, K*Cin_pad)            BN-folded stacked weights, matmul dtype
    b_ref : (C3p, 1)                    BN-folded stacked bias, f32
    o_ref : (C3p, TL)                   output tile
    """
    # im2col: K contiguous (Cin_pad, TL) tap slices.  After the wrapper-side phase
    # split, tap k lives at phase (k*dilation) % stride with unit-stride lane offset
    # (k*dilation) // stride, so there is no strided lane gather in the kernel.
    taps = []
    for k in range(K):
        p_k = (k * dilation) % stride
        q_k = (k * dilation) // stride
        taps.append(x_ref[p_k, :, pl.ds(q_k, TL)])
    g = taps[0] if K == 1 else jnp.concatenate(taps, axis=0)      # (K*Cin_pad, TL)

    # One fat MXU matmul for all three branches at once (f32 accumulation).
    acc = jnp.dot(w_ref[...], g, preferred_element_type=jnp.float32)  # (C3p, TL)
    o_ref[...] = jnp.maximum(acc + b_ref[...], 0.0).astype(o_ref.dtype)


def inception_block_forward(x, params, *, kernel_size, stride, dilation,
                            padding=2, use_bf16=True, tile_l=1024,
                            out_dtype=jnp.float32):
    """InceptionBlock forward (eval-mode BN). x: (N, Cin, L) float32, NCL layout."""
    N, Cin, L = x.shape
    K = kernel_size
    Cout = params['conv1_w'].shape[0]
    C3 = 3 * Cout
    assert tile_l % 128 == 0

    # PyTorch Conv1d output length.
    L_out = (L + 2 * padding - dilation * (K - 1) - 1) // stride + 1
    assert L_out > 0

    mm_dtype = jnp.bfloat16 if use_bf16 else jnp.float32
    sub_in = 16 if use_bf16 else 8
    sub_out = 16 if np.dtype(out_dtype) == np.dtype(jnp.bfloat16) else 8
    Cin_pad = _round_up(Cin, sub_in)
    C3p = _round_up(C3, sub_out)

    # ---- wrapper-side constant folding: BN(eval) into conv weight/bias, stack branches.
    ws, bs = [], []
    for i in (1, 2, 3):
        w = params[f'conv{i}_w']                       # (Cout, Cin, K)
        b = params[f'conv{i}_b']                       # (Cout,)
        g = params[f'bn{i}_gamma']
        bt = params[f'bn{i}_beta']
        m = params[f'bn{i}_mean']
        v = params[f'bn{i}_var']
        s = g / jnp.sqrt(v + BN_EPS)
        ws.append(w * s[:, None, None])
        bs.append(s * b + (bt - m * s))
    W = jnp.concatenate(ws, axis=0)                    # (C3, Cin, K)
    B = jnp.concatenate(bs, axis=0)                    # (C3,)
    # zero-pad output channels / input channels to the sublane tiles; im2col column
    # order is (tap k outer, channel inner) -> Wmat[o, k*Cin_pad + i] = W[o, i, k].
    W = jnp.pad(W, ((0, C3p - C3), (0, Cin_pad - Cin), (0, 0)))
    Wmat = jnp.transpose(W, (0, 2, 1)).reshape(C3p, K * Cin_pad).astype(mm_dtype)
    Bmat = jnp.pad(B, (0, C3p - C3)).reshape(C3p, 1).astype(jnp.float32)

    # ---- lane-dense output-L tiling + halo size.
    TL = min(_round_up(L_out, 128), tile_l)
    nLt = pl.cdiv(L_out, TL)
    Lout_pad = nLt * TL
    qmax = ((K - 1) * dilation) // stride              # max lane offset among taps
    HALO = _round_up(qmax, 128)                        # 0 when qmax == 0
    assert HALO <= TL, "kernel halo larger than a tile; raise tile_l"
    WIN = TL + HALO

    # ---- wrapper-side layout: conv padding + phase split (stride decimation) +
    # per-output-tile halo windows.  All cheap XLA slices/reshapes on the small
    # input stream; the kernel then only does contiguous, aligned accesses.
    Up = (nLt + 1) * TL                                # phase-domain length incl. halo room
    Lp = max(Up * stride, _round_up(L + 2 * padding, stride))
    Up = Lp // stride
    xp = jnp.pad(x, ((0, 0), (0, Cin_pad - Cin), (padding, Lp - L - padding)))
    xp = xp.astype(mm_dtype)                           # (N, Cin_pad, Lp)
    # phase split: x_ph[n, p, c, u] = xp[n, c, u*stride + p]
    x_ph = xp.reshape(N, Cin_pad, Up, stride).transpose(0, 3, 1, 2)
    main = lax.slice_in_dim(x_ph, 0, nLt * TL, axis=3)
    main = main.reshape(N, stride, Cin_pad, nLt, TL)
    if HALO > 0:
        halo = lax.slice_in_dim(x_ph, TL, (nLt + 1) * TL, axis=3)
        halo = halo.reshape(N, stride, Cin_pad, nLt, TL)[..., :HALO]
        tiles = jnp.concatenate([main, halo], axis=-1)
    else:
        tiles = main
    tiles = tiles.transpose(0, 3, 1, 2, 4)             # (N, nLt, stride, Cin_pad, WIN)

    kernel = functools.partial(_inception_kernel, K=K, stride=stride,
                               dilation=dilation, TL=TL)

    flops = 2 * N * nLt * C3p * (K * Cin_pad) * TL
    bytes_accessed = (int(tiles.size) * tiles.dtype.itemsize
                      + int(Wmat.size) * Wmat.dtype.itemsize
                      + int(Bmat.size) * 4
                      + N * C3p * Lout_pad * np.dtype(out_dtype).itemsize)

    out = pl.pallas_call(
        kernel,
        grid=(N, nLt),
        in_specs=[
            # per-(sample, L-tile) halo window -> VMEM does not scale with L.
            pl.BlockSpec((None, None, stride, Cin_pad, WIN),
                         lambda n, j: (n, j, 0, 0, 0)),
            pl.BlockSpec((C3p, K * Cin_pad), lambda n, j: (0, 0)),   # folded weights
            pl.BlockSpec((C3p, 1), lambda n, j: (0, 0)),             # folded bias
        ],
        out_specs=pl.BlockSpec((None, C3p, TL), lambda n, j: (n, 0, j)),
        out_shape=jax.ShapeDtypeStruct((N, C3p, Lout_pad), out_dtype),
        compiler_params=pltpu.CompilerParams(
            dimension_semantics=("parallel", "parallel")),
        cost_estimate=pl.CostEstimate(flops=flops, transcendentals=0,
                                      bytes_accessed=bytes_accessed),
    )(tiles, Wmat, Bmat)

    if C3p == C3 and Lout_pad == L_out:
        return out                                     # no trailing device copy
    return out[:, :C3, :L_out]


# ------------------- pure-JAX reference (correctness check only) -------------------
def inception_block_reference(x, params, *, kernel_size, stride, dilation, padding=2):
    outs = []
    for i in (1, 2, 3):
        w = params[f'conv{i}_w']
        b = params[f'conv{i}_b']
        y = lax.conv_general_dilated(
            x, w, (stride,), [(padding, padding)], rhs_dilation=(dilation,),
            dimension_numbers=('NCH', 'OIH', 'NCH'),
            precision=lax.Precision.HIGHEST)
        y = y + b.reshape(1, -1, 1)
        g = params[f'bn{i}_gamma']
        bt = params[f'bn{i}_beta']
        m = params[f'bn{i}_mean']
        v = params[f'bn{i}_var']
        s = g / jnp.sqrt(v + BN_EPS)
        y = y * s.reshape(1, -1, 1) + (bt - m * s).reshape(1, -1, 1)
        outs.append(jnp.maximum(y, 0.0))
    return jnp.concatenate(outs, axis=1)


def init_params(key, in_channels, out_channels, kernel_size):
    p = {}
    ks = jax.random.split(key, 18)
    idx = 0
    for i in (1, 2, 3):
        p[f'conv{i}_w'] = 0.2 * jax.random.normal(
            ks[idx], (out_channels, in_channels, kernel_size), jnp.float32); idx += 1
        p[f'conv{i}_b'] = 0.1 * jax.random.normal(
            ks[idx], (out_channels,), jnp.float32); idx += 1
        p[f'bn{i}_gamma'] = 1.0 + 0.1 * jax.random.normal(
            ks[idx], (out_channels,), jnp.float32); idx += 1
        p[f'bn{i}_beta'] = 0.1 * jax.random.normal(
            ks[idx], (out_channels,), jnp.float32); idx += 1
        p[f'bn{i}_mean'] = 0.1 * jax.random.normal(
            ks[idx], (out_channels,), jnp.float32); idx += 1
        p[f'bn{i}_var'] = 0.5 + jax.random.uniform(
            ks[idx], (out_channels,), jnp.float32); idx += 1
    return p


if __name__ == "__main__":
    # InceptionBlock(in_channels=4, out_channels=8, kernel_size=5, stride=1, dilation=1)
    N, Cin, Cout, K, L = 2, 4, 8, 5, 16
    key = jax.random.PRNGKey(0)
    kx, kp = jax.random.split(key)
    x = jax.random.normal(kx, (N, Cin, L), jnp.float32)
    params = init_params(kp, Cin, Cout, K)

    # 1) all-f32 path, tight tolerance.
    out_f32 = jax.block_until_ready(
        inception_block_forward(x, params, kernel_size=K, stride=1, dilation=1,
                                use_bf16=False))
    ref = jax.block_until_ready(
        inception_block_reference(x, params, kernel_size=K, stride=1, dilation=1))
    assert out_f32.shape == ref.shape == (N, 3 * Cout, 16), out_f32.shape
    err = float(jnp.max(jnp.abs(out_f32 - ref)))
    assert err < 1e-3, f"f32 kernel/reference mismatch, max abs err = {err}"

    # 2) bf16 matmul-operand path (default perf config), looser tolerance.
    out_bf16 = jax.block_until_ready(
        inception_block_forward(x, params, kernel_size=K, stride=1, dilation=1,
                                use_bf16=True))
    err_bf = float(jnp.max(jnp.abs(out_bf16 - ref)))
    assert err_bf < 5e-2, f"bf16 kernel/reference mismatch, max abs err = {err_bf}"

    # 3) strided + dilated config exercises the wrapper phase-split path.
    out_s = jax.block_until_ready(
        inception_block_forward(x, params, kernel_size=K, stride=2, dilation=2,
                                use_bf16=False))
    ref_s = jax.block_until_ready(
        inception_block_reference(x, params, kernel_size=K, stride=2, dilation=2))
    assert out_s.shape == ref_s.shape, (out_s.shape, ref_s.shape)
    err_s = float(jnp.max(jnp.abs(out_s - ref_s)))
    assert err_s < 1e-3, f"strided kernel/reference mismatch, max abs err = {err_s}"

    # 4) bf16-output (writeback-halving) config — shape / sanity check only.
    out_lo = jax.block_until_ready(
        inception_block_forward(x, params, kernel_size=K, stride=1, dilation=1,
                                use_bf16=True, out_dtype=jnp.bfloat16))
    assert out_lo.shape == ref.shape, out_lo.shape
    assert bool(jnp.all(jnp.isfinite(out_lo.astype(jnp.float32))))

    print("KERNEL_OK")
</pallas_src>

<mosaic_0001>
module attributes {stable_mosaic.version = 11 : i64} {
  func.func @_inception_kernel(%arg0: i32, %arg1: i32, %arg2: memref<1x1x1x8x256xf32, #tpu.memory_space<vmem>>, %arg3: memref<24x40xf32, #tpu.memory_space<vmem>>, %arg4: memref<24x1xf32, #tpu.memory_space<vmem>>, %arg5: memref<1x24x128xf32, #tpu.memory_space<vmem>>) attributes {dimension_semantics = [#tpu.dimension_semantics<parallel>, #tpu.dimension_semantics<parallel>], iteration_bounds = array<i64: 2, 1>, scalar_prefetch = 0 : i64, scratch_operands = 0 : i64, tpu.core_type = #tpu.core_type<tc>, window_params = [{transform_indices = @transform_0, window_bounds = array<i64: 1, 1, 1, 8, 256>}, {pipeline_mode = #tpu.pipeline_mode<synchronous>, transform_indices = @transform_1, window_bounds = array<i64: 24, 40>}, {pipeline_mode = #tpu.pipeline_mode<synchronous>, transform_indices = @transform_2, window_bounds = array<i64: 24, 1>}, {transform_indices = @transform_3, window_bounds = array<i64: 1, 24, 128>}]} {
    %c0 = arith.constant 0 : index
    %c0_0 = arith.constant 0 : index
    %c0_1 = arith.constant 0 : index
    %c0_2 = arith.constant 0 : index
    %c0_3 = arith.constant 0 : index
    %0 = vector.load %arg2[%c0, %c0_0, %c0_1, %c0_2, %c0_3] : memref<1x1x1x8x256xf32, #tpu.memory_space<vmem>>, vector<1x1x1x8x128xf32>
    %1 = vector.shape_cast %0 : vector<1x1x1x8x128xf32> to vector<8x128xf32>
    %c0_4 = arith.constant 0 : index
    %c0_5 = arith.constant 0 : index
    %c0_6 = arith.constant 0 : index
    %c0_7 = arith.constant 0 : index
    %c1 = arith.constant 1 : index
    %2 = vector.load %arg2[%c0_4, %c0_5, %c0_6, %c0_7, %c1] : memref<1x1x1x8x256xf32, #tpu.memory_space<vmem>>, vector<1x1x1x8x128xf32>
    %3 = vector.shape_cast %2 : vector<1x1x1x8x128xf32> to vector<8x128xf32>
    %c0_8 = arith.constant 0 : index
    %c0_9 = arith.constant 0 : index
    %c0_10 = arith.constant 0 : index
    %c0_11 = arith.constant 0 : index
    %c2 = arith.constant 2 : index
    %4 = vector.load %arg2[%c0_8, %c0_9, %c0_10, %c0_11, %c2] : memref<1x1x1x8x256xf32, #tpu.memory_space<vmem>>, vector<1x1x1x8x128xf32>
    %5 = vector.shape_cast %4 : vector<1x1x1x8x128xf32> to vector<8x128xf32>
    %c0_12 = arith.constant 0 : index
    %c0_13 = arith.constant 0 : index
    %c0_14 = arith.constant 0 : index
    %c0_15 = arith.constant 0 : index
    %c3 = arith.constant 3 : index
    %6 = vector.load %arg2[%c0_12, %c0_13, %c0_14, %c0_15, %c3] : memref<1x1x1x8x256xf32, #tpu.memory_space<vmem>>, vector<1x1x1x8x128xf32>
    %7 = vector.shape_cast %6 : vector<1x1x1x8x128xf32> to vector<8x128xf32>
    %c0_16 = arith.constant 0 : index
    %c0_17 = arith.constant 0 : index
    %c0_18 = arith.constant 0 : index
    %c0_19 = arith.constant 0 : index
    %c4 = arith.constant 4 : index
    %8 = vector.load %arg2[%c0_16, %c0_17, %c0_18, %c0_19, %c4] : memref<1x1x1x8x256xf32, #tpu.memory_space<vmem>>, vector<1x1x1x8x128xf32>
    %9 = vector.shape_cast %8 : vector<1x1x1x8x128xf32> to vector<8x128xf32>
    %10 = tpu.concatenate %1, %3, %5, %7, %9 in 0 : vector<8x128xf32>, vector<8x128xf32>, vector<8x128xf32>, vector<8x128xf32>, vector<8x128xf32> -> vector<40x128xf32>
    %c0_20 = arith.constant 0 : index
    %c0_21 = arith.constant 0 : index
    %11 = vector.load %arg3[%c0_20, %c0_21] : memref<24x40xf32, #tpu.memory_space<vmem>>, vector<24x40xf32>
    %cst = arith.constant dense<0.000000e+00> : vector<24x128xf32>
    %12 = tpu.matmul %11, %10, %cst {dimension_numbers = #tpu.dot_dimension_numbers<[1], [0], [0], [1], [0, 0, 1, 1], [], []>} : vector<24x40xf32>, vector<40x128xf32>, vector<24x128xf32> -> vector<24x128xf32>
    %c0_22 = arith.constant 0 : index
    %c0_23 = arith.constant 0 : index
    %13 = vector.load %arg4[%c0_22, %c0_23] : memref<24x1xf32, #tpu.memory_space<vmem>>, vector<24x1xf32>
    %14 = vector.broadcast %13 : vector<24x1xf32> to vector<24x128xf32>
    %15 = arith.addf %12, %14 : vector<24x128xf32>
    %cst_24 = arith.constant 0.000000e+00 : f32
    %16 = vector.broadcast %cst_24 : f32 to vector<24x128xf32>
    %17 = arith.maximumf %15, %16 : vector<24x128xf32>
    %c0_25 = arith.constant 0 : index
    %c0_26 = arith.constant 0 : index
    %c0_27 = arith.constant 0 : index
    %18 = vector.load %arg5[%c0_25, %c0_26, %c0_27] : memref<1x24x128xf32, #tpu.memory_space<vmem>>, vector<1x24x128xf32>
    %19 = vector.shape_cast %18 : vector<1x24x128xf32> to vector<24x128xf32>
    %20 = vector.shape_cast %17 : vector<24x128xf32> to vector<1x24x128xf32>
    tpu.vector_store %arg5[%c0_25, %c0_26, %c0_27], %20 {strides = array<i32>} : memref<1x24x128xf32, #tpu.memory_space<vmem>>, vector<1x24x128xf32>,
    return
  }
  func.func @transform_0(%arg0: i32, %arg1: i32) -> (i32, i32, i32, i32, i32) {
    %c0_i32 = arith.constant 0 : i32
    %c0_i32_0 = arith.constant 0 : i32
    %c0_i32_1 = arith.constant 0 : i32
    %c0_i32_2 = arith.constant 0 : i32
    return %arg0, %arg1, %c0_i32, %c0_i32_0, %c0_i32_1 : i32, i32, i32, i32, i32
  }
  func.func @transform_1(%arg0: i32, %arg1: i32) -> (i32, i32) {
    %c0_i32 = arith.constant 0 : i32
    %c0_i32_0 = arith.constant 0 : i32
    %c0_i32_1 = arith.constant 0 : i32
    return %c0_i32, %c0_i32_0 : i32, i32
  }
  func.func @transform_2(%arg0: i32, %arg1: i32) -> (i32, i32) {
    %c0_i32 = arith.constant 0 : i32
    %c0_i32_0 = arith.constant 0 : i32
    %c0_i32_1 = arith.constant 0 : i32
    return %c0_i32, %c0_i32_0 : i32, i32
  }
  func.func @transform_3(%arg0: i32, %arg1: i32) -> (i32, i32, i32) {
    %c0_i32 = arith.constant 0 : i32
    %c0_i32_0 = arith.constant 0 : i32
    return %arg0, %c0_i32, %arg1 : i32, i32, i32
  }
}

</mosaic_0001>

<bundles_post_ra>
// kernel: tpu_custom_call.1
= control target key start
LH: loop header
LB: loop body
LE: loop exit
PB: predicated region body
PF: predicated region fallthrough
CT: control target
= control target key end

     0   :  { %8 = vsyncpa [#allocation3], 0  ;;  %s908_s0 = inlined_call_operand.hbm [shape: f32[2,1,1,8,256], index: 0, kind: input, shape index: {}]   ;;  %s909_s1 = inlined_call_operand.vmem [shape: f32[24,40], index: 1, kind: input, shape index: {}]   ;;  %s910_s2 = inlined_call_operand.vmem [shape: f32[24,1], index: 2, kind: input, shape index: {}]   ;;  %s911_s3 = inlined_call_operand.hbm [shape: f32[2,24,128], index: 3, kind: output, shape index: {}]  }
   0x1   :  { %10 = vsyncpa [#allocation3 + $0x1], 0 }
   0x2   :  { %11 = vsyncpa [#allocation4], 0 }
   0x3   :  { %13 = vsyncpa [#allocation4 + $0x1], 0  ;;  %s725_s12 = smov 0   ;;  %s727_s13 = smov 0  }
   0x4   :  { %s729_s14 = smov 0   ;;  %s731_s15 = smov 0  }
   0x5   :  { %s733_s16 = smov 0   ;;  %s735_s17 = smov 0  }
   0x6 LB: > { %s456_s18 = sadd.s32 4294967295, %s692_s17   ;;  %s457_s19 = sadd.s32 4294967294, %s692_s17   ;;  %s692_s17 = sphi %s735_s17, %s19_s17   ;;  %s688_s16 = sphi %s733_s16, %s923_s16   ;;  %s684_s15 = sphi %s731_s15, %s922_s15   ;;  %s680_s14 = sphi %s729_s14, %s921_s14   ;;  %s676_s13 = sphi %s727_s13, %s920_s13   ;;  %s672_s12 = sphi %s725_s12, %s919_s12  }
   0x7   : > { %s31_s20 = sadd.s32 1, %s688_s16  ;;  %s40_s21 = sadd.s32 1, %s680_s14 }
   0x8   : > { %p33_p0 = scmp.ge.s32.totalorder %s31_s20, 2  ;;  %p47_p1 = scmp.ne.s32.totalorder %s680_s14, %s676_s13 }
   0x9   : > { %p48_p2 = scmp.eq.s32.totalorder %s692_s17, 0  ;;  %p53_p3 = scmp.ne.s32.totalorder %s676_s13, %s672_s12 }
   0xa   : > { %s925_s20 = smov (%p33_p0, %s31_s20), 0  ;;  %p54_p5 = scmp.eq.s32.totalorder %s456_s18, 0 }
   0xb   : > { %p766_p4 = por %p48_p2, %p47_p1  ;;  %s35_s23 = ssub.s32 %s688_s16, %s925_s20 }
   0xc   : > { %p121_p6 = scmp.eq.s32.totalorder %s456_s18, 1  ;;  %p38_p7 = scmp.eq.s32.totalorder %s35_s23, 0 }
   0xd   : > { %p772_p8 = por %p54_p5, %p53_p3  ;;  %p127_p10 = scmp.eq.s32.totalorder %s457_s19, 1 }
   0xe   : > { %p776_p9 = por %p121_p6, %p47_p1  ;;  %p523_p13 = scmp.lt.s32.totalorder %s692_s17, 2 }
   0xf   : > { %s781_s26 = scalar_select %p38_p7, %s680_s14, %s40_s21  }
  0x10   : > { %p783_p11 = por %p127_p10, %p53_p3  ;;  %s153_s28 = sand.u32 1, %s680_s14  }
  0x11   : > { %s460_s29 = sshll.u32 %s153_s28, 4  ;;  %s471_s30 = sshll.u32 %s688_s16, 8 }
  0x12   : > { %s915_s27 = scalar_select %p783_p11, 1, 0 }
  0x13   : > { %s165_s6 = scalar_lea.hbm %s908_s0, %s471_s30  ;;  %s157_s7 = scalar_lea.vmem [#allocation2], %s460_s29 }
  0x14   : > { %s167_s8 = sshll.u32 %s157_s7, 4  ;;  %p796_p0 = pnand %p523_p13, %p766_p4  ;;  %s168_s8 = int_to_ptr.vmem [resolvable:$true] %s167_s8 }
  0x15   : > { %p463_p1 = scmp.ge.s32.totalorder %s692_s17, 1  ;;  %p172_p2 = scmp.lt.s32.totalorder %s692_s17, 3 }
  0x16   : > { %s154_s10 = scalar_lea.sflag [#allocation3], %s153_s28  ;;  %p586_p3 = pneg %p796_p0 }
  0x17   : > { %s597_s11 = scalar_lea.vmem %s168_s8, 256  ;;  %s694_s18 = smov [#allocation2]  }
  0x18   : > { %p598_p5 = scmp.ne.s32.totalorder %s168_s8, %s597_s11  ;;  %s602_s19 = sshll.u32 %s694_s18, 4  ;;  %s603_s19 = int_to_ptr.vmem [resolvable:$false] %s602_s19 }
  0x19   : > { %s604_s21 = scalar_lea.vmem %s603_s19, 512  ;;  %p605_p10 = scmp.lt.s32.totalorder %s168_s8, %s603_s19 }
  0x1a   : > { %p600_p6 = pnand %p598_p5, %p586_p3  ;;  %p606_p12 = scmp.lt.s32.totalorder %s604_s21, %s597_s11 }
  0x1c   : > { %p601_p7 = pneg %p600_p6  ;;  %p607_p4 = por %p606_p12, %p605_p10 }
  0x1e   : > { %p608_p13 = pnand %p607_p4, %p601_p7 }
  0x20   : > { %611 = shalt.err (!%p608_p13)
}
  0x21   : > { %518 = dma.hbm_to_vmem [thread:$0]  (!%p796_p0), %s165_s6, 256, %s168_s8, %s154_s10  }
  0x22   : > { %p173_p11 = pnand %p463_p1, %p172_p2 }
  0x23   : > { %s811_s22 = sand.u32 (!%p173_p11), 1, %s676_s13  }
  0x24   : > { %176 = sbr.rel (%p173_p11) target bundleno = 390 (0x186), region = 32  ;;  %s464_s23 = sshll.u32 (!%p173_p11), %s811_s22, 4 }
  0x25   : > { %s179_s28 = scalar_lea.sflag (!%p173_p11), [#allocation3], %s811_s22  ;;  %s182_s29 = scalar_lea.vmem (!%p173_p11), [#allocation2], %s464_s23 }
  0x29   : > { %663 = dma.done.wait (%p772_p8), %s179_s28, 256  }
  0x2a   : > { %665 = vsyncadd (%p772_p8), %s179_s28, 4294967040  ;;  %v695_v0 = vmov 0.0   ;;  %v206_v1 = vld [vmem:[%s182_s29] sm:$0xff]  ;;  %s696_s30 = smov 125   ;;  %s697_s4 = smov 124   ;;  %v207_v2 = vld [vmem:[%s182_s29 + $0x8] sm:$0xff] }
  0x2b   : > { %480 = vmatprep.subr.mxu0 %v695_v0  ;;  %499 = vmatprep.subr.mxu1 %v695_v0  ;;  %vm698_vm0 = vmmov 0   ;;  %s699_s24 = smov 126   ;;  %v700_v3 = vmov 0   ;;  %s701_s5 = smov 127   ;;  %v242_v4 = vld [vmem:[%s910_s2 + $0x8] sm:$0xff]  ;;  %v241_v5 = vld [vmem:[%s910_s2] sm:$0xff] }
  0x2c   : > { %224 = vrot.lane.b32.xlu1 %v206_v1, %s696_s30  ;;  %231 = vrot.lane.b32.xlu0 %v206_v1, %s697_s4  ;;  %v243_v6 = vld [vmem:[%s910_s2 + $0x10] sm:$0xff]  ;;  %vm235_vm1 = vcmask 1014784   ;;  %vm228_vm2 = vcmask 1022976   ;;  %vm221_vm3 = vcmask 1031168   ;;  %vm214_vm4 = vcmask 1039360   ;;  %v239_v19 = vld [vmem:[%s909_s1 + $0x8] sm:$0xff] }
  0x2d   : > { %493 = vmatprep.mubr.msk.f32.mxu1 %vm698_vm0, %v695_v0  ;;  %490 = vmatprep.mubr.msk.f32.mxu0 %vm698_vm0, %v695_v0  ;;  %vm259_vm5 = vcmask 326656   ;;  %v238_v20 = vld [vmem:[%s909_s1] sm:$0xff]  ;;  %v240_v21 = vld [vmem:[%s909_s1 + $0x10] sm:$0xff]  ;;  %s702_s10 = smov [#allocation5]  }
  0x2e   : > { %583 = vset.pattern.permute.xlu1 %v700_v3  ;;  %582 = vset.pattern.permute.xlu0 %v700_v3  ;;  %s616_s11 = sshll.u32 %s702_s10, 4  ;;  %s617_s11 = int_to_ptr.vmem [resolvable:$false] %s616_s11 }
  0x2f   : > { %s618_s18 = scalar_lea.vmem %s617_s11, 768 }
  0x30   : > { %226 = vrot.lane.b32.xlu1 %v207_v2, %s696_s30  ;;  %233 = vrot.lane.b32.xlu0 %v207_v2, %s697_s4  ;;  %s509_s30 = smul.u32 24, %s811_s22 }
  0x32   : > { %s204_s4 = scalar_lea.vmem [#allocation5], %s509_s30 }
  0x34   : > { %219 = vrot.lane.b32.xlu1 %v207_v2, %s699_s24  ;;  %217 = vrot.lane.b32.xlu0 %v206_v1, %s699_s24  ;;  %s370_s24 = sshll.u32 %s204_s4, 4  ;;  %s855_s24 = int_to_ptr.vmem [resolvable:$true] %s370_s24 }
  0x35   : > { %s612_s9 = scalar_lea.vmem %s855_s24, 384  ;;  %p619_p0 = scmp.lt.s32.totalorder %s855_s24, %s617_s11 }
  0x36   : > { %p613_p8 = scmp.ne.s32.totalorder %s855_s24, %s612_s9  ;;  %p620_p1 = scmp.lt.s32.totalorder %s618_s18, %s612_s9 }
  0x38   : > { %212 = vrot.lane.b32.xlu1 %v207_v2, %s701_s5  ;;  %210 = vrot.lane.b32.xlu0 %v206_v1, %s701_s5  ;;  %s510_s5 = smul.u32 384, %s684_s15  ;;  %s356_s15 = scalar_lea.sflag [#allocation4], %s811_s22 }
  0x39   : > { %p614_p11 = pnand %p613_p8, %p776_p9  ;;  %p621_p2 = por %p620_p1, %p619_p0 }
  0x3a   : > { %s860_s8 = scalar_lea.hbm %s911_s3, %s510_s5 }
  0x3b   : > { %p615_p12 = pneg %p614_p11 }
  0x3c   : > { %251 = vperm.xlu1 %583, %v242_v4   ;;  %246 = vperm.xlu0 %582, %v241_v5  }
  0x3d   : > { %p622_p3 = pnand %p621_p2, %p615_p12 }
  0x40   : > { %256 = vperm.xlu1 %583, %v243_v6  }
  0x9e   : > { %v225_v7 = vpop.permute.xlu1 %224  ;;  %v232_v8 = vpop.permute.xlu0 %231 }
  0xa2   : > { %v227_v9 = vpop.permute.xlu1 %226  ;;  %v234_v10 = vpop.permute.xlu0 %233 }
  0xa3   : > { %v236_v11 = vsel %vm235_vm1, %v232_v8, %v234_v10  ;;  %v229_v12 = vsel %vm228_vm2, %v225_v7, %v227_v9 }
  0xa4   : > { %481 = vmatpush3.msra.mxu0 %v236_v11  ;;  %504 = vmatpush3.msra.mxu1 %v236_v11 }
  0xa5   : > { %482 = vmatprep.subr.mxu0 %v695_v0  ;;  %500 = vmatprep.subr.mxu1 %v695_v0 }
  0xa6   : > { %v220_v13 = vpop.permute.xlu1 %219  ;;  %483 = vmatpush3.msra.mxu0 %v229_v12  ;;  %505 = vmatpush3.msra.mxu1 %v229_v12  ;;  %v218_v14 = vpop.permute.xlu0 %217 }
  0xa7   : > { %484 = vmatprep.subr.mxu0 %v695_v0  ;;  %501 = vmatprep.subr.mxu1 %v695_v0  ;;  %v222_v15 = vsel %vm221_vm3, %v218_v14, %v220_v13 }
  0xa8   : > { %485 = vmatpush3.msra.mxu0 %v222_v15  ;;  %506 = vmatpush3.msra.mxu1 %v222_v15 }
  0xa9   : > { %486 = vmatprep.subr.mxu0 %v695_v0  ;;  %502 = vmatprep.subr.mxu1 %v695_v0 }
  0xaa   : > { %v213_v16 = vpop.permute.xlu1 %212  ;;  %v211_v17 = vpop.permute.xlu0 %210 }
  0xab   : > { %v215_v18 = vsel %vm214_vm4, %v211_v17, %v213_v16 }
  0xac   : > { %487 = vmatpush3.msra.mxu0 %v215_v18  ;;  %507 = vmatpush3.msra.mxu1 %v215_v18 }
  0xad   : > { %503 = vmatprep.subr.mxu1 %v695_v0  ;;  %488 = vmatprep.subr.mxu0 %v695_v0 }
  0xae   : > { %508 = vmatpush3.msra.mxu1 %v206_v1  ;;  %489 = vmatpush3.msra.mxu0 %v206_v1 }
  0xaf   : > { %494 = vmatmul.mubr.msk.f32.vlgmr.msra.gmra.mxu1 %vm259_vm5, %v239_v19  ;;  %491 = vmatmul.mubr.msk.f32.vlgmr.msra.gmra.mxu0 %vm259_vm5, %v238_v20 }
  0xb0   : > { %496 = vmatprep.mubr.msk.f32.mxu1 %vm698_vm0, %v695_v0 }
  0xb3   : > { %497 = vmatmul.mubr.msk.f32.gmra.mxu1 %vm259_vm5, %v240_v21 }
  0xb7   : > { %v252_v22 = vpop.permute.xlu1 %251  ;;  %v247_v23 = vpop.permute.xlu0 %246 }
  0xbb   : > { %v257_v32 = vpop.permute.xlu1 %256 }
 0x16f   : > { %v340_v24 = vpop.f32.mrf.mxu1  ;;  %v335_v25 = vpop.f32.mrf.mxu0 }
 0x170   : > { %v341_v26 = vadd.f32 %v340_v24, %v252_v22  ;;  %v336_v27 = vadd.f32 %v335_v25, %v247_v23 }
 0x171   : > { %v495_v28 = vpop.f32.mrf.mxu1  ;;  %v492_v29 = vpop.f32.mrf.mxu0 }
 0x172   : > { %v350_v30 = vmax.f32 %v341_v26, 0.0  ;;  %v349_v31 = vmax.f32 %v336_v27, 0.0 }
 0x173   : > { %v345_v33 = vpop.f32.mrf.mxu1 }
 0x174   : > { %353 = vst [vmem:[%s204_s4 + $0x8] sm:$0xff] %v350_v30  ;;  %352 = vst [vmem:[%s204_s4] sm:$0xff] %v349_v31  ;;  %v346_v34 = vadd.f32 %v345_v33, %v257_v32 }
 0x175   : > { %v498_v35 = vpop.f32.mrf.mxu1 }
 0x176   : > { %v351_v36 = vmax.f32 %v346_v34, 0.0 }
 0x178   : > { %354 = vst [vmem:[%s204_s4 + $0x10] sm:$0xff] %v351_v36 }
 0x179   : > { %625 = shalt.err (!%p622_p3)
}
 0x17a   : > { %s626_s19 = scalar_lea.hbm %s860_s8, 384  ;;  %s630_s28 = scalar_lea.hbm %s911_s3, 768 }
 0x17b   : > { %p627_p5 = scmp.ne.s32.totalorder %s860_s8, %s626_s19  ;;  %p631_p10 = scmp.lt.s32.totalorder %s860_s8, %s911_s3 }
 0x17c   : > { %p632_p4 = scmp.lt.s32.totalorder %s630_s28, %s626_s19 }
 0x17d   : > { %p628_p6 = pnand %p627_p5, %p776_p9 }
 0x17e   : > { %p633_p13 = por %p632_p4, %p631_p10 }
 0x17f   : > { %p629_p7 = pneg %p628_p6 }
 0x181   : > { %p634_p8 = pnand %p633_p13, %p629_p7 }
 0x183   : > { %637 = shalt.err (!%p634_p8)
}
 0x184   : > { %s703_s4 = smov 128   ;;  %s704_s5 = smov 8  }
 0x185   : > { %513 = dma.vmem_to_hbm [thread:$0]  (%p776_p9), %s855_s24, 384, %s860_s8, %s356_s15, %s703_s4, %s703_s4, %s704_s5  }
 0x186 PF: > { %s385_s6 = sand.u32 1, %s672_s12   ;;  %p917_p11 = scmp.ne.s32.totalorder %s915_s27, 0 }
 0x187   : > { %p918_p12 = scmp.ge.s32.totalorder %s692_s17, 2  ;;  %s386_s7 = scalar_lea.sflag [#allocation4], %s385_s6 }
 0x189   : > { %p520_p0 = pnand %p918_p12, %p917_p11 }
 0x18b   : > { %p521_p1 = pneg %p520_p0 }
 0x18d   : > { %667 = dma.done.wait (%p521_p1), %s386_s7, 384  }
 0x18e   : > { %669 = vsyncadd (%p521_p1), %s386_s7, 4294966912  ;;  %s19_s17 = sadd.s32 1, %s692_s17   ;;  %s919_s12 = smov %s676_s13 }
 0x18f   : > { %p16_p2 = scmp.ge.s32.totalorder %s19_s17, 4   ;;  %s920_s13 = smov %s680_s14 }
 0x190   : > { %s921_s14 = smov %s781_s26  ;;  %s922_s15 = smov %s688_s16 }
 0x191   : > { %s923_s16 = smov %s925_s20  ;;  %18 = sbr.rel (!%p16_p2) target bundleno = 6 (0x6), region = 77 }
 0x196   :  { %391 = vsyncpa [#allocation3], 1 }
 0x197   :  { %393 = vsyncpa [#allocation3 + $0x1], 1 }
 0x198   :  { %394 = vsyncpa [#allocation4], 1 }
 0x199   :  { %396 = vsyncpa [#allocation4 + $0x1], 1 }

</bundles_post_ra>
